<compile_context>
chip_gen: v5e
topology: v5e:2x2
jax: 0.10.0
libtpu: 0.0.40
codegen_flags: <defaults>
</compile_context>

<pallas_src>
import jax
import jax.numpy as jnp
from jax.experimental import pallas as pl
from jax.experimental.pallas import tpu as pltpu

_LANES = 128          # vreg lane width
_TARGET_ROWS = 2048   # ~1 MiB per f32 stream block (per buffer)


# ---------------------------------------------------------------------------
# Layout helpers (wrapper side — no HBM copies in the aligned case)
# ---------------------------------------------------------------------------
def _round_up(x, m):
    return ((x + m - 1) // m) * m


def _sublane_multiple(dtype):
    # min second-to-last tile dim: f32 -> 8, bf16 -> 16, int8/fp8 -> 32
    return max(8, 32 // jnp.dtype(dtype).itemsize)


def _prep_slab(x, pad_value):
    """Flatten and view as (rows, 128). Free (bitcast reshape) when
    numel % 128 == 0; otherwise pads only to the next multiple of 128."""
    flat = x.reshape(-1)
    e = flat.shape[0]
    rows = pl.cdiv(e, _LANES)
    if e % _LANES != 0:
        # Rare unaligned case: small neutral pad (this is the only copy path).
        flat = jnp.pad(flat, (0, rows * _LANES - e), constant_values=pad_value)
    return flat.reshape(rows, _LANES), rows


def _tiles(rows, sublane, target_rows):
    """Block rows (multiple of `sublane`, capped at target) + number of blocks."""
    t = min(_round_up(rows, sublane), _round_up(target_rows, sublane))
    g = pl.cdiv(rows, t)
    return t, g


def _block_map(g_stream, g_total):
    """Row-block index map; clamps when this stream finishes before the grid."""
    if g_stream == g_total:
        return lambda i: (i, 0)
    return lambda i: (jnp.minimum(i, g_stream - 1), 0)


def _row_mask(i, t, rows_valid):
    """Mask of valid rows for block i (None == statically no masking needed)."""
    if rows_valid % t == 0:
        return None
    rows = jax.lax.broadcasted_iota(jnp.int32, (t, _LANES), 0) + i * t
    return rows < rows_valid


def _masked(mask, x, fill):
    return x if mask is None else jnp.where(mask, x, fill)


# ---------------------------------------------------------------------------
# Fused kernel: coarse SSE, beta-weighted fine SSE, sum(log beta), sum(sigma)
# ---------------------------------------------------------------------------
def _make_fused_kernel(t_rgb, g_rgb, r_rgb, t_sig, g_sig, r_sig, g_total):
    def kernel(rc_ref, rf_ref, tg_ref, bb_ref, sg_ref, out_ref, acc_ref):
        i = pl.program_id(0)

        @pl.when(i == 0)
        def _():
            acc_ref[...] = jnp.zeros_like(acc_ref)

        def do_rgb():
            mask = _row_mask(i, t_rgb, r_rgb)
            tg = tg_ref[...].astype(jnp.float32)
            dc = _masked(mask, rc_ref[...].astype(jnp.float32) - tg, 0.0)
            df = _masked(mask, rf_ref[...].astype(jnp.float32) - tg, 0.0)
            beta = _masked(mask, bb_ref[...].astype(jnp.float32), 1.0)
            # EUP approximate reciprocal + one Newton step (hidden under DMA).
            r = pl.reciprocal(beta, approx=True)
            r = r * (2.0 - beta * r)
            w = r * r                       # 1/beta^2 ; the 1/2 is in the wrapper
            # Reduce each block to one vreg; only that vreg is RMW'd in VMEM.
            acc_ref[0] = acc_ref[0] + jnp.sum((dc * dc).reshape(-1, 8, _LANES), axis=0)
            acc_ref[1] = acc_ref[1] + jnp.sum((df * df * w).reshape(-1, 8, _LANES), axis=0)
            acc_ref[2] = acc_ref[2] + jnp.sum(jnp.log(beta).reshape(-1, 8, _LANES), axis=0)

        def do_sig():
            mask = _row_mask(i, t_sig, r_sig)
            sg = _masked(mask, sg_ref[...].astype(jnp.float32), 0.0)
            acc_ref[3] = acc_ref[3] + jnp.sum(sg.reshape(-1, 8, _LANES), axis=0)

        # Statically drop the gate when the stream spans the full grid.
        if g_rgb == g_total:
            do_rgb()
        else:
            pl.when(i < g_rgb)(do_rgb)
        if g_sig == g_total:
            do_sig()
        else:
            pl.when(i < g_sig)(do_sig)

        @pl.when(i == pl.num_programs(0) - 1)
        def _():
            out_ref[0] = jnp.sum(acc_ref[0])
            out_ref[1] = jnp.sum(acc_ref[1])
            out_ref[2] = jnp.sum(acc_ref[2])
            out_ref[3] = jnp.sum(acc_ref[3])

    return kernel


def _fused_sums(rgb_c, rgb_f, tgt, beta, sigmas, block_rows=_TARGET_ROWS):
    n, c = tgt.shape

    # Single fused materialization of the per-element beta stream (one write of
    # n*c elements); pad value 1.0 => log()=0 and the weight stays finite.
    beta_bc = jnp.broadcast_to(beta.reshape(n, 1), (n, c))

    rc, r_rgb = _prep_slab(rgb_c, 0.0)
    rf, _ = _prep_slab(rgb_f, 0.0)
    tg, _ = _prep_slab(tgt, 0.0)
    bb, _ = _prep_slab(beta_bc, 1.0)
    sg, r_sig = _prep_slab(sigmas, 0.0)

    sub_rgb = max(_sublane_multiple(x.dtype) for x in (rc, rf, tg, bb))
    sub_sig = _sublane_multiple(sg.dtype)
    t_rgb, g_rgb = _tiles(r_rgb, sub_rgb, block_rows)
    t_sig, g_sig = _tiles(r_sig, sub_sig, block_rows)
    g = max(g_rgb, g_sig)

    kernel = _make_fused_kernel(t_rgb, g_rgb, r_rgb, t_sig, g_sig, r_sig, g)

    bytes_in = sum(int(x.size) * x.dtype.itemsize for x in (rc, rf, tg, bb, sg))
    cost = pl.CostEstimate(flops=int(12 * n * c + sigmas.size),
                           transcendentals=int(2 * n * c),
                           bytes_accessed=int(bytes_in) + 16)

    sums = pl.pallas_call(
        kernel,
        out_shape=jax.ShapeDtypeStruct((4,), jnp.float32),
        grid_spec=pltpu.PrefetchScalarGridSpec(
            num_scalar_prefetch=0,
            grid=(g,),
            in_specs=[
                pl.BlockSpec((t_rgb, _LANES), _block_map(g_rgb, g)),
                pl.BlockSpec((t_rgb, _LANES), _block_map(g_rgb, g)),
                pl.BlockSpec((t_rgb, _LANES), _block_map(g_rgb, g)),
                pl.BlockSpec((t_rgb, _LANES), _block_map(g_rgb, g)),
                pl.BlockSpec((t_sig, _LANES), _block_map(g_sig, g)),
            ],
            out_specs=pl.BlockSpec(memory_space=pltpu.MemorySpace.SMEM),
            scratch_shapes=[pltpu.VMEM((4, 8, _LANES), jnp.float32)],
        ),
        compiler_params=pltpu.CompilerParams(dimension_semantics=("arbitrary",)),
        cost_estimate=cost,
    )(rc, rf, tg, bb, sg)
    return sums


# ---------------------------------------------------------------------------
# Fallback kernel: plain sum((pred - tgt)^2) (used when 'beta' is absent)
# ---------------------------------------------------------------------------
def _make_sse_kernel(t, rows_valid):
    def kernel(p_ref, q_ref, out_ref, acc_ref):
        i = pl.program_id(0)

        @pl.when(i == 0)
        def _():
            acc_ref[...] = jnp.zeros_like(acc_ref)

        mask = _row_mask(i, t, rows_valid)
        d = _masked(mask,
                    p_ref[...].astype(jnp.float32) - q_ref[...].astype(jnp.float32),
                    0.0)
        acc_ref[...] = acc_ref[...] + jnp.sum((d * d).reshape(-1, 8, _LANES), axis=0)

        @pl.when(i == pl.num_programs(0) - 1)
        def _():
            out_ref[0] = jnp.sum(acc_ref[...])

    return kernel


def _sse_sum(pred, tgt, block_rows=_TARGET_ROWS):
    p, rows = _prep_slab(pred, 0.0)
    q, _ = _prep_slab(tgt, 0.0)
    sub = max(_sublane_multiple(p.dtype), _sublane_multiple(q.dtype))
    t, g = _tiles(rows, sub, block_rows)
    kernel = _make_sse_kernel(t, rows)

    bytes_in = int(p.size) * p.dtype.itemsize + int(q.size) * q.dtype.itemsize
    cost = pl.CostEstimate(flops=int(3 * pred.size), transcendentals=0,
                           bytes_accessed=bytes_in + 4)

    sums = pl.pallas_call(
        kernel,
        out_shape=jax.ShapeDtypeStruct((1,), jnp.float32),
        grid_spec=pltpu.PrefetchScalarGridSpec(
            num_scalar_prefetch=0,
            grid=(g,),
            in_specs=[pl.BlockSpec((t, _LANES), lambda i: (i, 0)),
                      pl.BlockSpec((t, _LANES), lambda i: (i, 0))],
            out_specs=pl.BlockSpec(memory_space=pltpu.MemorySpace.SMEM),
            scratch_shapes=[pltpu.VMEM((8, _LANES), jnp.float32)],
        ),
        compiler_params=pltpu.CompilerParams(dimension_semantics=("arbitrary",)),
        cost_estimate=cost,
    )(p, q)
    return sums[0]


# ---------------------------------------------------------------------------
# Public entry point (mirrors NerfWLoss.forward)
# ---------------------------------------------------------------------------
def nerfw_loss(inputs, targets, coef=1.0, lambda_u=0.01, block_rows=_TARGET_ROWS):
    """JAX/Pallas equivalent of NerfWLoss.forward; returns a dict of scalars."""
    n, c = targets.shape
    denom = float(n * c)
    ret = {}

    has_fine = 'rgb_fine' in inputs
    has_beta = 'beta' in inputs

    if has_fine and has_beta:
        sigmas = inputs['transient_sigmas']
        sums = _fused_sums(inputs['rgb_coarse'], inputs['rgb_fine'], targets,
                           inputs['beta'], sigmas, block_rows=block_rows)
        ret['c_l'] = 0.5 * sums[0] / denom
        ret['f_l'] = 0.5 * sums[1] / denom        # 1/(2 beta^2): the 1/2 lives here
        # beta streamed per element (n*c copies): sum(log)/ (n*c) == mean(log beta)
        ret['b_l'] = 3.0 + sums[2] / denom
        ret['s_l'] = lambda_u * sums[3] / float(sigmas.size)
    else:
        ret['c_l'] = 0.5 * _sse_sum(inputs['rgb_coarse'], targets,
                                    block_rows=block_rows) / denom
        if has_fine:
            ret['f_l'] = 0.5 * _sse_sum(inputs['rgb_fine'], targets,
                                        block_rows=block_rows) / denom

    return {k: coef * v for k, v in ret.items()}


if __name__ == "__main__":
    key = jax.random.PRNGKey(0)
    k1, k2, k3, k4, k5 = jax.random.split(key, 5)

    N, C, S = 256, 3, 8  # rays, rgb channels, transient samples per ray
    rgb_coarse = jax.random.uniform(k1, (N, C), jnp.float32)
    rgb_fine = jax.random.uniform(k2, (N, C), jnp.float32)
    targets = jax.random.uniform(k3, (N, C), jnp.float32)
    beta = jax.random.uniform(k4, (N,), jnp.float32, minval=0.05, maxval=1.0)
    sigmas = jax.random.uniform(k5, (N, S), jnp.float32)

    inputs = {
        'rgb_coarse': rgb_coarse,
        'rgb_fine': rgb_fine,
        'beta': beta,
        'transient_sigmas': sigmas,
    }

    # Pure-JAX reference (mirrors the PyTorch forward exactly).
    ref = {
        'c_l': 0.5 * jnp.mean((rgb_coarse - targets) ** 2),
        'f_l': jnp.mean((rgb_fine - targets) ** 2 / (2.0 * beta[:, None] ** 2)),
        'b_l': 3.0 + jnp.mean(jnp.log(beta)),
        's_l': 0.01 * jnp.mean(sigmas),
    }
    tol = 1e-4  # Newton-refined EUP reciprocal -> near-f32 accuracy

    # 1) Default block sizing (single grid step).
    out = jax.block_until_ready(nerfw_loss(inputs, targets, coef=1.0, lambda_u=0.01))
    for k in ref:
        assert jnp.allclose(out[k], ref[k], rtol=tol, atol=tol), (k, out[k], ref[k])

    # 2) Tiny blocks -> multi-step grid, sigma grid longer than rgb grid
    #    (exercises clamped index_map + pl.when gating + edge-row masking).
    out2 = jax.block_until_ready(nerfw_loss(inputs, targets, block_rows=8))
    for k in ref:
        assert jnp.allclose(out2[k], ref[k], rtol=tol, atol=tol), (k, out2[k], ref[k])

    # 3) rgb grid longer than sigma grid (other gating direction).
    N2, S2 = 1024, 1
    j1, j2, j3, j4, j5 = jax.random.split(jax.random.PRNGKey(1), 5)
    rc2 = jax.random.uniform(j1, (N2, C), jnp.float32)
    rf2 = jax.random.uniform(j2, (N2, C), jnp.float32)
    tg2 = jax.random.uniform(j3, (N2, C), jnp.float32)
    bt2 = jax.random.uniform(j4, (N2,), jnp.float32, minval=0.05, maxval=1.0)
    sg2 = jax.random.uniform(j5, (N2, S2), jnp.float32)
    out3 = jax.block_until_ready(
        nerfw_loss({'rgb_coarse': rc2, 'rgb_fine': rf2, 'beta': bt2,
                    'transient_sigmas': sg2}, tg2, block_rows=8))
    ref3 = {
        'c_l': 0.5 * jnp.mean((rc2 - tg2) ** 2),
        'f_l': jnp.mean((rf2 - tg2) ** 2 / (2.0 * bt2[:, None] ** 2)),
        'b_l': 3.0 + jnp.mean(jnp.log(bt2)),
        's_l': 0.01 * jnp.mean(sg2),
    }
    for k in ref3:
        assert jnp.allclose(out3[k], ref3[k], rtol=tol, atol=tol), (k, out3[k], ref3[k])

    # 4) Fallback path: fine prediction but no beta/transient head.
    out_nb = jax.block_until_ready(
        nerfw_loss({'rgb_coarse': rgb_coarse, 'rgb_fine': rgb_fine}, targets))
    assert jnp.allclose(out_nb['c_l'], ref['c_l'], rtol=1e-5, atol=1e-5)
    assert jnp.allclose(out_nb['f_l'], 0.5 * jnp.mean((rgb_fine - targets) ** 2),
                        rtol=1e-5, atol=1e-5)

    # 5) Fallback path: coarse-only.
    out_co = jax.block_until_ready(nerfw_loss({'rgb_coarse': rgb_coarse}, targets))
    assert jnp.allclose(out_co['c_l'], ref['c_l'], rtol=1e-5, atol=1e-5)

    print("KERNEL_OK")
</pallas_src>

<mosaic_0001>
module attributes {stable_mosaic.version = 11 : i64} {
  func.func @kernel(%arg0: i32, %arg1: memref<8x128xf32, #tpu.memory_space<vmem>>, %arg2: memref<8x128xf32, #tpu.memory_space<vmem>>, %arg3: memref<8x128xf32, #tpu.memory_space<vmem>>, %arg4: memref<8x128xf32, #tpu.memory_space<vmem>>, %arg5: memref<16x128xf32, #tpu.memory_space<vmem>>, %arg6: memref<4xf32, #tpu.memory_space<smem>>, %arg7: memref<4x8x128xf32, #tpu.memory_space<vmem>>) attributes {dimension_semantics = [#tpu.dimension_semantics<arbitrary>], iteration_bounds = array<i64: 1>, scalar_prefetch = 0 : i64, scratch_operands = 1 : i64, tpu.core_type = #tpu.core_type<tc>, window_params = [{transform_indices = @transform_0, window_bounds = array<i64: 8, 128>}, {transform_indices = @transform_1, window_bounds = array<i64: 8, 128>}, {transform_indices = @transform_2, window_bounds = array<i64: 8, 128>}, {transform_indices = @transform_3, window_bounds = array<i64: 8, 128>}, {transform_indices = @transform_4, window_bounds = array<i64: 16, 128>}, {transform_indices = @transform_5, window_bounds = array<i64: 4>}]} {
    %c0_i32 = arith.constant 0 : i32
    %0 = arith.cmpi eq, %arg0, %c0_i32 : i32
    %1 = arith.extui %0 : i1 to i32
    %c0_i32_0 = arith.constant 0 : i32
    %2 = arith.cmpi ne, %1, %c0_i32_0 : i32
    scf.if %2 {
      %cst_40 = arith.constant 0.000000e+00 : f32
      %67 = vector.broadcast %cst_40 : f32 to vector<4x8x128xf32>
      %c0_41 = arith.constant 0 : index
      %c0_42 = arith.constant 0 : index
      %c0_43 = arith.constant 0 : index
      %68 = vector.load %arg7[%c0_41, %c0_42, %c0_43] : memref<4x8x128xf32, #tpu.memory_space<vmem>>, vector<4x8x128xf32>
      tpu.vector_store %arg7[%c0_41, %c0_42, %c0_43], %67 {strides = array<i32>} : memref<4x8x128xf32, #tpu.memory_space<vmem>>, vector<4x8x128xf32>,
    } else {
    }
    %3 = tpu.iota {dimensions = array<i32: 0>} : vector<8x128xi32>
    %c8_i32 = arith.constant 8 : i32
    %4 = arith.muli %arg0, %c8_i32 : i32
    %5 = vector.broadcast %4 : i32 to vector<8x128xi32>
    %6 = arith.addi %3, %5 : vector<8x128xi32>
    %c6_i32 = arith.constant 6 : i32
    %7 = vector.broadcast %c6_i32 : i32 to vector<8x128xi32>
    %8 = arith.cmpi slt, %6, %7 : vector<8x128xi32>
    %c0 = arith.constant 0 : index
    %c0_1 = arith.constant 0 : index
    %9 = vector.load %arg3[%c0, %c0_1] : memref<8x128xf32, #tpu.memory_space<vmem>>, vector<8x128xf32>
    %c0_2 = arith.constant 0 : index
    %c0_3 = arith.constant 0 : index
    %10 = vector.load %arg1[%c0_2, %c0_3] : memref<8x128xf32, #tpu.memory_space<vmem>>, vector<8x128xf32>
    %11 = arith.subf %10, %9 : vector<8x128xf32>
    %cst = arith.constant 0.000000e+00 : f32
    %12 = vector.broadcast %cst : f32 to vector<8x128xf32>
    %13 = arith.select %8, %11, %12 : vector<8x128xi1>, vector<8x128xf32>
    %c0_4 = arith.constant 0 : index
    %c0_5 = arith.constant 0 : index
    %14 = vector.load %arg2[%c0_4, %c0_5] : memref<8x128xf32, #tpu.memory_space<vmem>>, vector<8x128xf32>
    %15 = arith.subf %14, %9 : vector<8x128xf32>
    %cst_6 = arith.constant 0.000000e+00 : f32
    %16 = vector.broadcast %cst_6 : f32 to vector<8x128xf32>
    %17 = arith.select %8, %15, %16 : vector<8x128xi1>, vector<8x128xf32>
    %c0_7 = arith.constant 0 : index
    %c0_8 = arith.constant 0 : index
    %18 = vector.load %arg4[%c0_7, %c0_8] : memref<8x128xf32, #tpu.memory_space<vmem>>, vector<8x128xf32>
    %cst_9 = arith.constant 1.000000e+00 : f32
    %19 = vector.broadcast %cst_9 : f32 to vector<8x128xf32>
    %20 = arith.select %8, %18, %19 : vector<8x128xi1>, vector<8x128xf32>
    %21 = tpu.reciprocal %20 {approx = true} : vector<8x128xf32> -> vector<8x128xf32>
    %22 = arith.mulf %20, %21 : vector<8x128xf32>
    %cst_10 = arith.constant 2.000000e+00 : f32
    %23 = vector.broadcast %cst_10 : f32 to vector<8x128xf32>
    %24 = arith.subf %23, %22 : vector<8x128xf32>
    %25 = arith.mulf %21, %24 : vector<8x128xf32>
    %26 = arith.mulf %25, %25 : vector<8x128xf32>
    %c0_11 = arith.constant 0 : index
    %c0_12 = arith.constant 0 : index
    %c0_13 = arith.constant 0 : index
    %27 = vector.load %arg7[%c0_11, %c0_12, %c0_13] : memref<4x8x128xf32, #tpu.memory_space<vmem>>, vector<1x8x128xf32>
    %28 = vector.shape_cast %27 : vector<1x8x128xf32> to vector<8x128xf32>
    %29 = arith.mulf %13, %13 : vector<8x128xf32>
    %30 = vector.shape_cast %29 : vector<8x128xf32> to vector<1x8x128xf32>
    %cst_14 = arith.constant dense<0.000000e+00> : vector<8x128xf32>
    %31 = vector.multi_reduction <add>, %30, %cst_14 [0] : vector<1x8x128xf32> to vector<8x128xf32>
    %32 = arith.addf %28, %31 : vector<8x128xf32>
    %c0_15 = arith.constant 0 : index
    %c0_16 = arith.constant 0 : index
    %c0_17 = arith.constant 0 : index
    %33 = vector.load %arg7[%c0_15, %c0_16, %c0_17] : memref<4x8x128xf32, #tpu.memory_space<vmem>>, vector<1x8x128xf32>
    %34 = vector.shape_cast %33 : vector<1x8x128xf32> to vector<8x128xf32>
    %35 = vector.shape_cast %32 : vector<8x128xf32> to vector<1x8x128xf32>
    tpu.vector_store %arg7[%c0_15, %c0_16, %c0_17], %35 {strides = array<i32>} : memref<4x8x128xf32, #tpu.memory_space<vmem>>, vector<1x8x128xf32>,
    %c1 = arith.constant 1 : index
    %c0_18 = arith.constant 0 : index
    %c0_19 = arith.constant 0 : index
    %36 = vector.load %arg7[%c1, %c0_18, %c0_19] : memref<4x8x128xf32, #tpu.memory_space<vmem>>, vector<1x8x128xf32>
    %37 = vector.shape_cast %36 : vector<1x8x128xf32> to vector<8x128xf32>
    %38 = arith.mulf %17, %17 : vector<8x128xf32>
    %39 = arith.mulf %38, %26 : vector<8x128xf32>
    %40 = vector.shape_cast %39 : vector<8x128xf32> to vector<1x8x128xf32>
    %cst_20 = arith.constant dense<0.000000e+00> : vector<8x128xf32>
    %41 = vector.multi_reduction <add>, %40, %cst_20 [0] : vector<1x8x128xf32> to vector<8x128xf32>
    %42 = arith.addf %37, %41 : vector<8x128xf32>
    %c1_21 = arith.constant 1 : index
    %c0_22 = arith.constant 0 : index
    %c0_23 = arith.constant 0 : index
    %43 = vector.load %arg7[%c1_21, %c0_22, %c0_23] : memref<4x8x128xf32, #tpu.memory_space<vmem>>, vector<1x8x128xf32>
    %44 = vector.shape_cast %43 : vector<1x8x128xf32> to vector<8x128xf32>
    %45 = vector.shape_cast %42 : vector<8x128xf32> to vector<1x8x128xf32>
    tpu.vector_store %arg7[%c1_21, %c0_22, %c0_23], %45 {strides = array<i32>} : memref<4x8x128xf32, #tpu.memory_space<vmem>>, vector<1x8x128xf32>,
    %c2 = arith.constant 2 : index
    %c0_24 = arith.constant 0 : index
    %c0_25 = arith.constant 0 : index
    %46 = vector.load %arg7[%c2, %c0_24, %c0_25] : memref<4x8x128xf32, #tpu.memory_space<vmem>>, vector<1x8x128xf32>
    %47 = vector.shape_cast %46 : vector<1x8x128xf32> to vector<8x128xf32>
    %48 = math.log %20 : vector<8x128xf32>
    %49 = vector.shape_cast %48 : vector<8x128xf32> to vector<1x8x128xf32>
    %cst_26 = arith.constant dense<0.000000e+00> : vector<8x128xf32>
    %50 = vector.multi_reduction <add>, %49, %cst_26 [0] : vector<1x8x128xf32> to vector<8x128xf32>
    %51 = arith.addf %47, %50 : vector<8x128xf32>
    %c2_27 = arith.constant 2 : index
    %c0_28 = arith.constant 0 : index
    %c0_29 = arith.constant 0 : index
    %52 = vector.load %arg7[%c2_27, %c0_28, %c0_29] : memref<4x8x128xf32, #tpu.memory_space<vmem>>, vector<1x8x128xf32>
    %53 = vector.shape_cast %52 : vector<1x8x128xf32> to vector<8x128xf32>
    %54 = vector.shape_cast %51 : vector<8x128xf32> to vector<1x8x128xf32>
    tpu.vector_store %arg7[%c2_27, %c0_28, %c0_29], %54 {strides = array<i32>} : memref<4x8x128xf32, #tpu.memory_space<vmem>>, vector<1x8x128xf32>,
    %c0_30 = arith.constant 0 : index
    %c0_31 = arith.constant 0 : index
    %55 = vector.load %arg5[%c0_30, %c0_31] : memref<16x128xf32, #tpu.memory_space<vmem>>, vector<16x128xf32>
    %c3 = arith.constant 3 : index
    %c0_32 = arith.constant 0 : index
    %c0_33 = arith.constant 0 : index
    %56 = vector.load %arg7[%c3, %c0_32, %c0_33] : memref<4x8x128xf32, #tpu.memory_space<vmem>>, vector<1x8x128xf32>
    %57 = vector.shape_cast %56 : vector<1x8x128xf32> to vector<8x128xf32>
    %58 = vector.shape_cast %55 : vector<16x128xf32> to vector<2x8x128xf32>
    %cst_34 = arith.constant dense<0.000000e+00> : vector<8x128xf32>
    %59 = vector.multi_reduction <add>, %58, %cst_34 [0] : vector<2x8x128xf32> to vector<8x128xf32>
    %60 = arith.addf %57, %59 : vector<8x128xf32>
    %c3_35 = arith.constant 3 : index
    %c0_36 = arith.constant 0 : index
    %c0_37 = arith.constant 0 : index
    %61 = vector.load %arg7[%c3_35, %c0_36, %c0_37] : memref<4x8x128xf32, #tpu.memory_space<vmem>>, vector<1x8x128xf32>
    %62 = vector.shape_cast %61 : vector<1x8x128xf32> to vector<8x128xf32>
    %63 = vector.shape_cast %60 : vector<8x128xf32> to vector<1x8x128xf32>
    tpu.vector_store %arg7[%c3_35, %c0_36, %c0_37], %63 {strides = array<i32>} : memref<4x8x128xf32, #tpu.memory_space<vmem>>, vector<1x8x128xf32>,
    %c0_i32_38 = arith.constant 0 : i32
    %64 = arith.cmpi eq, %arg0, %c0_i32_38 : i32
    %65 = arith.extui %64 : i1 to i32
    %c0_i32_39 = arith.constant 0 : i32
    %66 = arith.cmpi ne, %65, %c0_i32_39 : i32
    scf.if %66 {
      %c0_40 = arith.constant 0 : index
      %c0_41 = arith.constant 0 : index
      %c0_42 = arith.constant 0 : index
      %67 = vector.load %arg7[%c0_40, %c0_41, %c0_42] : memref<4x8x128xf32, #tpu.memory_space<vmem>>, vector<1x8x128xf32>
      %68 = vector.shape_cast %67 : vector<1x8x128xf32> to vector<8x128xf32>
      %69 = vector.shape_cast %68 : vector<8x128xf32> to vector<1x8x128xf32>
      %cst_43 = arith.constant dense<0.000000e+00> : vector<1xf32>
      %70 = vector.multi_reduction <add>, %69, %cst_43 [1, 2] : vector<1x8x128xf32> to vector<1xf32>
      %71 = vector.shape_cast %70 : vector<1xf32> to vector<1x1x1xf32>
      %72 = vector.extract %71[0, 0, 0] : f32 from vector<1x1x1xf32>
      %c0_44 = arith.constant 0 : index
      %73 = memref.load %arg6[%c0_44] : memref<4xf32, #tpu.memory_space<smem>>
      memref.store %72, %arg6[%c0_44] : memref<4xf32, #tpu.memory_space<smem>>
      %c1_45 = arith.constant 1 : index
      %c0_46 = arith.constant 0 : index
      %c0_47 = arith.constant 0 : index
      %74 = vector.load %arg7[%c1_45, %c0_46, %c0_47] : memref<4x8x128xf32, #tpu.memory_space<vmem>>, vector<1x8x128xf32>
      %75 = vector.shape_cast %74 : vector<1x8x128xf32> to vector<8x128xf32>
      %76 = vector.shape_cast %75 : vector<8x128xf32> to vector<1x8x128xf32>
      %cst_48 = arith.constant dense<0.000000e+00> : vector<1xf32>
      %77 = vector.multi_reduction <add>, %76, %cst_48 [1, 2] : vector<1x8x128xf32> to vector<1xf32>
      %78 = vector.shape_cast %77 : vector<1xf32> to vector<1x1x1xf32>
      %79 = vector.extract %78[0, 0, 0] : f32 from vector<1x1x1xf32>
      %c1_49 = arith.constant 1 : index
      %80 = memref.load %arg6[%c1_49] : memref<4xf32, #tpu.memory_space<smem>>
      memref.store %79, %arg6[%c1_49] : memref<4xf32, #tpu.memory_space<smem>>
      %c2_50 = arith.constant 2 : index
      %c0_51 = arith.constant 0 : index
      %c0_52 = arith.constant 0 : index
      %81 = vector.load %arg7[%c2_50, %c0_51, %c0_52] : memref<4x8x128xf32, #tpu.memory_space<vmem>>, vector<1x8x128xf32>
      %82 = vector.shape_cast %81 : vector<1x8x128xf32> to vector<8x128xf32>
      %83 = vector.shape_cast %82 : vector<8x128xf32> to vector<1x8x128xf32>
      %cst_53 = arith.constant dense<0.000000e+00> : vector<1xf32>
      %84 = vector.multi_reduction <add>, %83, %cst_53 [1, 2] : vector<1x8x128xf32> to vector<1xf32>
      %85 = vector.shape_cast %84 : vector<1xf32> to vector<1x1x1xf32>
      %86 = vector.extract %85[0, 0, 0] : f32 from vector<1x1x1xf32>
      %c2_54 = arith.constant 2 : index
      %87 = memref.load %arg6[%c2_54] : memref<4xf32, #tpu.memory_space<smem>>
      memref.store %86, %arg6[%c2_54] : memref<4xf32, #tpu.memory_space<smem>>
      %c3_55 = arith.constant 3 : index
      %c0_56 = arith.constant 0 : index
      %c0_57 = arith.constant 0 : index
      %88 = vector.load %arg7[%c3_55, %c0_56, %c0_57] : memref<4x8x128xf32, #tpu.memory_space<vmem>>, vector<1x8x128xf32>
      %89 = vector.shape_cast %88 : vector<1x8x128xf32> to vector<8x128xf32>
      %90 = vector.shape_cast %89 : vector<8x128xf32> to vector<1x8x128xf32>
      %cst_58 = arith.constant dense<0.000000e+00> : vector<1xf32>
      %91 = vector.multi_reduction <add>, %90, %cst_58 [1, 2] : vector<1x8x128xf32> to vector<1xf32>
      %92 = vector.shape_cast %91 : vector<1xf32> to vector<1x1x1xf32>
      %93 = vector.extract %92[0, 0, 0] : f32 from vector<1x1x1xf32>
      %c3_59 = arith.constant 3 : index
      %94 = memref.load %arg6[%c3_59] : memref<4xf32, #tpu.memory_space<smem>>
      memref.store %93, %arg6[%c3_59] : memref<4xf32, #tpu.memory_space<smem>>
    } else {
    }
    return
  }
  func.func @transform_0(%arg0: i32) -> (i32, i32) {
    %c0_i32 = arith.constant 0 : i32
    %c0_i32_0 = arith.constant 0 : i32
    return %arg0, %c0_i32 : i32, i32
  }
  func.func @transform_1(%arg0: i32) -> (i32, i32) {
    %c0_i32 = arith.constant 0 : i32
    %c0_i32_0 = arith.constant 0 : i32
    return %arg0, %c0_i32 : i32, i32
  }
  func.func @transform_2(%arg0: i32) -> (i32, i32) {
    %c0_i32 = arith.constant 0 : i32
    %c0_i32_0 = arith.constant 0 : i32
    return %arg0, %c0_i32 : i32, i32
  }
  func.func @transform_3(%arg0: i32) -> (i32, i32) {
    %c0_i32 = arith.constant 0 : i32
    %c0_i32_0 = arith.constant 0 : i32
    return %arg0, %c0_i32 : i32, i32
  }
  func.func @transform_4(%arg0: i32) -> (i32, i32) {
    %c0_i32 = arith.constant 0 : i32
    %c0_i32_0 = arith.constant 0 : i32
    return %arg0, %c0_i32 : i32, i32
  }
  func.func @transform_5(%arg0: i32) -> i32 {
    %c0_i32 = arith.constant 0 : i32
    %c0_i32_0 = arith.constant 0 : i32
    return %c0_i32 : i32
  }
}

</mosaic_0001>

<bundles_post_ra>
// kernel: tpu_custom_call.1
= control target key start
LH: loop header
LB: loop body
LE: loop exit
PB: predicated region body
PF: predicated region fallthrough
CT: control target
= control target key end

     0   :  { %10 = vsyncpa [#allocation4], 0  ;;  %s433_s0 = inlined_call_operand.hbm [shape: f32[6,128], index: 0, kind: input, shape index: {}]   ;;  %s434_s1 = inlined_call_operand.hbm [shape: f32[6,128], index: 1, kind: input, shape index: {}]   ;;  %s435_s2 = inlined_call_operand.hbm [shape: f32[6,128], index: 2, kind: input, shape index: {}]   ;;  %s436_s3 = inlined_call_operand.hbm [shape: f32[6,128], index: 3, kind: input, shape index: {}]   ;;  %s437_s4 = inlined_call_operand.hbm [shape: f32[16,128], index: 4, kind: input, shape index: {}]   ;;  %s438_s5 = inlined_call_operand.hbm [shape: f32[4], index: 5, kind: output, shape index: {}]  }
   0x1   :  { %11 = vsyncpa [#allocation7], 0 }
   0x2   :  { %12 = vsyncpa [#allocation10], 0  ;;  %s30_s20 = sshll.u32 %s434_s1, 4  ;;  %s31_s20 = int_to_ptr.hbm [resolvable:$true] %s30_s20 }
   0x3   :  { %13 = vsyncpa [#allocation5], 0  ;;  %s374_s21 = smov [#allocation6]   ;;  %s52_s25 = sshll.u32 %s436_s3, 4  ;;  %s53_s25 = int_to_ptr.hbm [resolvable:$true] %s52_s25 }
   0x4   :  { %s32_s22 = sshll.u32 %s374_s21, 4  ;;  %s375_s26 = smov [#allocation9]   ;;  %s33_s22 = int_to_ptr.vmem [resolvable:$true] %s32_s22 }
   0x5   :  { %35 = dma.hbm_to_vmem [thread:$0]  %s31_s20, 128, %s33_s22, [#allocation7]  }
   0x6   :  { %s54_s27 = sshll.u32 %s375_s26, 4  ;;  %s19_s30 = sshll.u32 %s433_s0, 4  ;;  %s55_s27 = int_to_ptr.vmem [resolvable:$true] %s54_s27  ;;  %s20_s30 = int_to_ptr.hbm [resolvable:$true] %s19_s30 }
   0x7   :  { %57 = dma.hbm_to_vmem [thread:$0]  %s53_s25, 128, %s55_s27, [#allocation10]  }
   0x8   :  { %s41_s7 = sshll.u32 %s435_s2, 4  ;;  %s376_s8 = smov [#allocation3]   ;;  %s42_s7 = int_to_ptr.hbm [resolvable:$true] %s41_s7 }
   0x9   :  { %s21_s9 = sshll.u32 %s376_s8, 4  ;;  %s377_s3 = smov [#allocation8]   ;;  %s22_s9 = int_to_ptr.vmem [resolvable:$true] %s21_s9 }
   0xa   :  { %24 = dma.hbm_to_vmem [thread:$0]  %s20_s30, 128, %s22_s9, [#allocation4]  }
   0xb   :  { %s43_s10 = sshll.u32 %s377_s3, 4  ;;  %s62_s13 = sshll.u32 %s437_s4, 4  ;;  %s44_s10 = int_to_ptr.vmem [resolvable:$true] %s43_s10  ;;  %s63_s13 = int_to_ptr.hbm [resolvable:$true] %s62_s13 }
   0xc   :  { %46 = dma.hbm_to_vmem [thread:$0]  %s42_s7, 128, %s44_s10, [#allocation7]  }
   0xd   :  { %s378_s0 = smov [#allocation11]   ;;  %s379_s15 = smov 128  }
   0xe   :  { %s64_s14 = sshll.u32 %s378_s0, 4  ;;  %s380_s16 = smov 8   ;;  %s65_s14 = int_to_ptr.vmem [resolvable:$true] %s64_s14 }
   0xf   :  { %70 = dma.hbm_to_vmem [thread:$0]  %s63_s13, 256, %s65_s14, [#allocation10], %s379_s15, %s379_s15, %s380_s16  }
  0x10   :  { %366 = dma.done.wait [#allocation4], 128  }
  0x11   :  { %367 = vsyncadd [#allocation4], 4294967168 }
  0x12   :  { %368 = dma.done.wait [#allocation7], 256  }
  0x13   :  { %369 = vsyncadd [#allocation7], 4294967040 }
  0x14   :  { %370 = dma.done.wait [#allocation10], 384  }
  0x15   :  { %371 = vsyncadd [#allocation10], 4294966912  ;;  %v99_v0 = vlaneseq  ;;  %v105_v2 = vld [vmem:[#allocation8] sm:$0xff]  ;;  %v106_v3 = vld [vmem:[#allocation3] sm:$0xff]  ;;  %s201_s18 = sshll.u32 %s438_s5, 4  ;;  %s381_s22 = smov [#allocation12]   ;;  %s202_s18 = int_to_ptr.hbm [resolvable:$true] %s201_s18 }
  0x16   :  { %v107_v4 = vsub.f32 %v106_v3, %v105_v2  ;;  %v112_v5 = vld [vmem:[#allocation9] sm:$0xff]  ;;  %v109_v9 = vld [vmem:[#allocation6] sm:$0xff]  ;;  %v138_v16 = vld [vmem:[#allocation11] sm:$0xff] }
  0x17   :  { %v100_v1 = vshrl.u32 %v99_v0, 7  ;;  %v110_v10 = vsub.f32 %v109_v9, %v105_v2  ;;  %v139_v17 = vld [vmem:[#allocation11 + $0x8] sm:$0xff] }
  0x18   :  { %v142_v21 = vadd.f32 %v139_v17, %v138_v16 }
  0x19   :  { %vm104_vm0 = vcmp.lt.s32.totalorder %v100_v1, 6 }
  0x1a   :  { %v113_v6 = vsel %vm104_vm0, %v112_v5, 1.0  ;;  %v108_v7 = vsel %vm104_vm0, %v107_v4, 0.0  ;;  %v111_v15 = vsel %vm104_vm0, %v110_v10, 0.0 }
  0x1b   :  { %230 = vlog2.f32 %v113_v6  ;;  %v120_v8 = vmul.f32 %v108_v7, %v108_v7  ;;  %v126_v20 = vmul.f32 %v111_v15, %v111_v15 }
  0x1c   :  { %232 = vrcp.f32 %v113_v6 }
  0x1d   :  { %149 = vadd.xlane.f32.xlu0 %v120_v8 }
  0x21   :  { %v231_v11 = vpop.eup %230 }
  0x22   :  { %v233_v12 = vpop.eup %232  ;;  %v134_v13 = vmul.f32 0.6931472, %v231_v11 }
  0x23   :  { %v115_v14 = vmul.f32 %v233_v12, %v113_v6 }
  0x24   :  { %173 = vadd.xlane.f32.xlu1 %v134_v13 }
  0x25   :  { %v116_v18 = vsub.f32 2.0, %v115_v14 }
  0x27   :  { %v117_v19 = vmul.f32 %v233_v12, %v116_v18 }
  0x29   :  { %v118_v22 = vmul.f32 %v117_v19, %v117_v19 }
  0x2b   :  { %v127_v23 = vmul.f32 %v126_v20, %v118_v22 }
  0x2c   :  { %185 = vadd.xlane.f32.xlu1 %v142_v21 }
  0x2d   :  { %161 = vadd.xlane.f32.xlu0 %v127_v23 }
  0x90   :  { %v150_v24 = vpop.xlane.xlu0 %149 }
  0x91   :  { %v151_v25 = vrot.slane %v150_v24, 4 }
  0x93   :  { %v152_v26 = vadd.f32 %v151_v25, %v150_v24 }
  0x95   :  { %v153_v27 = vrot.slane %v152_v26, 2 }
  0x97   :  { %v174_v28 = vpop.xlane.xlu1 %173  ;;  %v154_v30 = vadd.f32 %v153_v27, %v152_v26 }
  0x98   :  { %v175_v29 = vrot.slane %v174_v28, 4 }
  0x99   :  { %v155_v31 = vrot.slane %v154_v30, 1 }
  0x9a   :  { %v176_v32 = vadd.f32 %v175_v29, %v174_v28 }
  0x9b   :  { %v156_v33 = vadd.f32 %v155_v31, %v154_v30 }
  0x9c   :  { %v177_v35 = vrot.slane %v176_v32, 2 }
  0x9d   :  { %214 = vpush %v156_v33 }
  0x9e   :  { %v178_v42 = vadd.f32 %v177_v35, %v176_v32 }
  0x9f   :  { %v186_v34 = vpop.xlane.xlu1 %185 }
  0xa0   :  { %v187_v36 = vrot.slane %v186_v34, 4  ;;  %v162_v37 = vpop.xlane.xlu0 %161  ;;  %v179_v46 = vrot.slane %v178_v42, 1 }
  0xa1   :  { %v163_v38 = vrot.slane %v162_v37, 4 }
  0xa2   :  { %v188_v39 = vadd.f32 %v187_v36, %v186_v34  ;;  %v180_v51 = vadd.f32 %v179_v46, %v178_v42 }
  0xa3   :  { %v164_v40 = vadd.f32 %v163_v38, %v162_v37 }
  0xa4   :  { %v189_v41 = vrot.slane %v188_v39, 2 }
  0xa5   :  { %v165_v43 = vrot.slane %v164_v40, 2 }
  0xa6   :  { %v190_v44 = vadd.f32 %v189_v41, %v188_v39 }
  0xa7   :  { %v166_v45 = vadd.f32 %v165_v43, %v164_v40 }
  0xa8   :  { %v191_v47 = vrot.slane %v190_v44, 1 }
  0xa9   :  { %v167_v48 = vrot.slane %v166_v45, 1 }
  0xaa   :  { %v192_v50 = vadd.f32 %v191_v47, %v190_v44 }
  0xab   :  { %v168_v49 = vadd.f32 %v167_v48, %v166_v45 }
  0xad   :  { %216 = vpush %v168_v49 }
  0xae   :  { %218 = vpush %v180_v51 }
  0xaf   :  { %220 = vpush %v192_v50 }
  0xce   :  { %s215_s2 = spop %214 }
  0xcf   :  { %159 = sst [smem:[#allocation12]] %s215_s2 }
  0xde   :  { %s217_s19 = spop %216 }
  0xdf   :  { %171 = sst [smem:[#allocation12 + $0x1]] %s217_s19  ;;  %s219_s20 = spop %218 }
  0xe0   :  { %183 = sst [smem:[#allocation12 + $0x2]] %s219_s20  ;;  %s221_s21 = spop %220 }
  0xe1   :  { %195 = sst [smem:[#allocation12 + $0x3]] %s221_s21 }
  0xe2   :  { %204 = dma.smem_to_hbm %s381_s22, 16, %s202_s18, [#allocation5]  }
  0xe3   :  { %372 = dma.done.wait [#allocation5], 16  }
  0xe4   :  { %373 = vsyncadd [#allocation5], 4294967280 }
  0xe5   :  { %209 = sfence }
  0xe6   :  { %210 = vsyncpa [#allocation4], 1 }
  0xe7   :  { %211 = vsyncpa [#allocation7], 1 }
  0xe8   :  { %212 = vsyncpa [#allocation10], 1 }
  0xe9   :  { %213 = vsyncpa [#allocation5], 1 }

</bundles_post_ra>
